<compile_context>
chip_gen: v7x
topology: tpu7x:2x2x1
jax: 0.10.0
libtpu: 0.0.40
codegen_flags: <defaults>
</compile_context>

<pallas_src>
import functools
import math

import jax
import jax.numpy as jnp
from jax import lax
from jax.experimental import pallas as pl
from jax.experimental.pallas import tpu as pltpu

_NEG_BIG = -1e30  # large finite negative (safer than -inf when re-used in exp)


def _pick_tile(dim, target, align):
    """Largest t <= target with t % align == 0 and dim % t == 0, else full dim."""
    if dim <= target:
        return dim
    t = (target // align) * align
    while t >= align:
        if dim % t == 0:
            return t
        t -= align
    return dim  # full extent is always a legal block size


# ----------------------------------------------------------------------------
# Tiled linear:  y = x @ W + b     (x: (M, K), W: (K, N), b: (N,))
# ----------------------------------------------------------------------------
def _linear_kernel_fullk(x_ref, w_ref, b_ref, o_ref):
    # Full contraction dim in one tile: single MXU pass, no accumulator revisit.
    acc = jnp.dot(x_ref[...], w_ref[...], preferred_element_type=jnp.float32)
    o_ref[...] = (acc + b_ref[...].astype(jnp.float32)).astype(o_ref.dtype)


def _linear_kernel_ktiled(x_ref, w_ref, b_ref, o_ref, acc_ref):
    @pl.when(pl.program_id(2) == 0)
    def _init():
        acc_ref[...] = jnp.zeros(acc_ref.shape, acc_ref.dtype)

    acc_ref[...] += jnp.dot(x_ref[...], w_ref[...],
                            preferred_element_type=jnp.float32)

    @pl.when(pl.program_id(2) == pl.num_programs(2) - 1)
    def _finalize():
        o_ref[...] = (acc_ref[...] + b_ref[...].astype(jnp.float32)).astype(o_ref.dtype)


def _linear(x2d, w, b, *, compute_dtype=jnp.bfloat16, out_dtype=None,
            tm=256, tn=256, tk=512, max_full_k=2048):
    M, K = x2d.shape
    K2, N = w.shape
    assert K == K2
    out_dtype = x2d.dtype if out_dtype is None else out_dtype

    # bf16 (or f32) MXU operands; accumulation and bias stay f32.
    xc = x2d.astype(compute_dtype)
    wc = w.astype(compute_dtype)
    b2 = b.reshape(1, N).astype(jnp.float32)

    tm = _pick_tile(M, tm, 8)
    tn = _pick_tile(N, tn, 128)

    if K <= max_full_k:
        grid = (M // tm, N // tn)
        return pl.pallas_call(
            _linear_kernel_fullk,
            out_shape=jax.ShapeDtypeStruct((M, N), out_dtype),
            grid=grid,
            in_specs=[
                pl.BlockSpec((tm, K), lambda i, j: (i, 0)),
                pl.BlockSpec((K, tn), lambda i, j: (0, j)),
                pl.BlockSpec((1, tn), lambda i, j: (0, j)),
            ],
            out_specs=pl.BlockSpec((tm, tn), lambda i, j: (i, j)),
            compiler_params=pltpu.CompilerParams(
                dimension_semantics=("parallel", "parallel")),
        )(xc, wc, b2)

    tk = _pick_tile(K, tk, 128)
    grid = (M // tm, N // tn, K // tk)
    return pl.pallas_call(
        _linear_kernel_ktiled,
        out_shape=jax.ShapeDtypeStruct((M, N), out_dtype),
        grid=grid,
        in_specs=[
            pl.BlockSpec((tm, tk), lambda i, j, k: (i, k)),
            pl.BlockSpec((tk, tn), lambda i, j, k: (k, j)),
            pl.BlockSpec((1, tn), lambda i, j, k: (0, j)),
        ],
        out_specs=pl.BlockSpec((tm, tn), lambda i, j, k: (i, j)),
        scratch_shapes=[pltpu.VMEM((tm, tn), jnp.float32)],
        compiler_params=pltpu.CompilerParams(
            dimension_semantics=("parallel", "parallel", "arbitrary")),
    )(xc, wc, b2)


# ----------------------------------------------------------------------------
# Flash-style causal attention over (B*nh, T, hd)
#   grid = (B*nh, n_flat) where n_flat enumerates only lower-triangular
#   (q-block, kv-block) pairs via scalar-prefetched SMEM index maps.
# ----------------------------------------------------------------------------
def _flash_attn_kernel(qi_ref, ki_ref, q_ref, k_ref, v_ref, o_ref,
                       m_sc, l_sc, acc_sc, qs_sc, *, scale):
    f = pl.program_id(1)
    qi = qi_ref[f]
    ki = ki_ref[f]
    cdt = q_ref.dtype  # compute dtype (bf16 or f32)

    @pl.when(ki == 0)
    def _init():
        m_sc[...] = jnp.full(m_sc.shape, _NEG_BIG, m_sc.dtype)
        l_sc[...] = jnp.zeros(l_sc.shape, l_sc.dtype)
        acc_sc[...] = jnp.zeros(acc_sc.shape, acc_sc.dtype)
        # Hoisted scaled q for this q-row block (scale applied in f32, stored
        # once, reused for every kv step of the group).
        qs_sc[...] = (q_ref[0].astype(jnp.float32) * scale).astype(cdt)

    # q @ k^T, contracting the last dims (no transposed copy of k).
    s = lax.dot_general(qs_sc[...], k_ref[0], (((1,), (1,)), ((), ())),
                        preferred_element_type=jnp.float32)

    def _online_update(s_blk):
        m_prev = m_sc[...]
        m_new = jnp.maximum(m_prev, jnp.max(s_blk, axis=-1, keepdims=True))
        alpha = jnp.exp(m_prev - m_new)
        p = jnp.exp(s_blk - m_new)
        l_sc[...] = alpha * l_sc[...] + jnp.sum(p, axis=-1, keepdims=True)
        acc_sc[...] = alpha * acc_sc[...] + jnp.dot(
            p.astype(cdt), v_ref[0], preferred_element_type=jnp.float32)
        m_sc[...] = m_new

    # Off-diagonal kv blocks are fully visible: no mask work at all.
    @pl.when(ki < qi)
    def _full_block():
        _online_update(s)

    # Diagonal block (always the last kv block for this q row since tq == tk):
    # apply the causal mask, update, then finalize.
    @pl.when(ki == qi)
    def _diag_block():
        row = lax.broadcasted_iota(jnp.int32, s.shape, 0)
        col = lax.broadcasted_iota(jnp.int32, s.shape, 1)
        _online_update(jnp.where(col <= row, s, _NEG_BIG))
        inv_l = pl.reciprocal(l_sc[...], approx=True)   # EUP slot, ~free
        o_ref[0] = (acc_sc[...] * inv_l).astype(o_ref.dtype)


def _attention(q, k, v, *, out_dtype, blk_target=256):
    BH, T, hd = q.shape
    scale = 1.0 / math.sqrt(hd)
    t = _pick_tile(T, blk_target, 8)        # tq == tk == t
    nq = T // t

    # Flattened lower-triangular (q-block, kv-block) enumeration.
    qi_of = jnp.asarray([i for i in range(nq) for _ in range(i + 1)], dtype=jnp.int32)
    ki_of = jnp.asarray([j for i in range(nq) for j in range(i + 1)], dtype=jnp.int32)
    n_flat = int(qi_of.shape[0])

    kernel = functools.partial(_flash_attn_kernel, scale=scale)

    q_spec = pl.BlockSpec((1, t, hd), lambda bh, f, qm, km: (bh, qm[f], 0))
    kv_spec = pl.BlockSpec((1, t, hd), lambda bh, f, qm, km: (bh, km[f], 0))
    o_spec = pl.BlockSpec((1, t, hd), lambda bh, f, qm, km: (bh, qm[f], 0))

    return pl.pallas_call(
        kernel,
        out_shape=jax.ShapeDtypeStruct((BH, T, hd), out_dtype),
        grid_spec=pltpu.PrefetchScalarGridSpec(
            num_scalar_prefetch=2,
            grid=(BH, n_flat),
            in_specs=[q_spec, kv_spec, kv_spec],
            out_specs=o_spec,
            scratch_shapes=[
                pltpu.VMEM((t, 1), jnp.float32),    # running max
                pltpu.VMEM((t, 1), jnp.float32),    # running sum
                pltpu.VMEM((t, hd), jnp.float32),   # output accumulator
                pltpu.VMEM((t, hd), q.dtype),       # hoisted scaled q block
            ]),
        compiler_params=pltpu.CompilerParams(
            dimension_semantics=("parallel", "arbitrary")),
    )(qi_of, ki_of, q, k, v)


# ----------------------------------------------------------------------------
# Module forward (glue in plain JAX, hot paths in Pallas)
# ----------------------------------------------------------------------------
def causal_self_attention(x, params, n_head, compute_dtype=jnp.bfloat16):
    B, T, C = x.shape
    hd = C // n_head

    # qkv projection: (B*T, C) @ (C, 3C) + (3C,)  -> produced directly in the
    # compute dtype so the head relayout below moves half the bytes.
    qkv = _linear(x.reshape(B * T, C), params["w_attn"], params["b_attn"],
                  compute_dtype=compute_dtype, out_dtype=compute_dtype)

    # Single relayout to head-major (B, nh, T, hd) for q, k, v.
    # TODO(synk): when hd % 128 == 0 this transpose (and the inverse one below)
    # can be folded into the attention BlockSpecs via column-offset index maps;
    # for hd = 64 that would violate the (8,128) lane-block constraint.
    qkv = qkv.reshape(B, T, 3, n_head, hd).transpose(2, 0, 3, 1, 4)
    q = qkv[0].reshape(B * n_head, T, hd)
    k = qkv[1].reshape(B * n_head, T, hd)
    v = qkv[2].reshape(B * n_head, T, hd)

    # Causal flash attention per (batch*head); output stays in compute dtype.
    # TODO(synk): v5e-only lane-dense (2 heads / step) output packing not implemented.
    y = _attention(q, k, v, out_dtype=compute_dtype)            # (B*nh, T, hd)
    y = y.reshape(B, n_head, T, hd).transpose(0, 2, 1, 3).reshape(B * T, C)

    # Output projection (f32 result, matching the input dtype).
    # TODO(synk): dropout omitted (config.dropout == 0.0 / eval mode -> identity).
    y = _linear(y, params["w_proj"], params["b_proj"],
                compute_dtype=compute_dtype, out_dtype=x.dtype)
    return y.reshape(B, T, C)


# ----------------------------------------------------------------------------
# Pure-JAX reference for validation
# ----------------------------------------------------------------------------
def reference(x, params, n_head):
    B, T, C = x.shape
    hd = C // n_head
    qkv = x @ params["w_attn"] + params["b_attn"]
    q, k, v = jnp.split(qkv, 3, axis=-1)
    q = q.reshape(B, T, n_head, hd).transpose(0, 2, 1, 3)
    k = k.reshape(B, T, n_head, hd).transpose(0, 2, 1, 3)
    v = v.reshape(B, T, n_head, hd).transpose(0, 2, 1, 3)
    att = (q @ k.transpose(0, 1, 3, 2)) / math.sqrt(hd)
    mask = jnp.tril(jnp.ones((T, T), dtype=bool))
    att = jnp.where(mask[None, None], att, -jnp.inf)
    att = jax.nn.softmax(att, axis=-1)
    y = att @ v
    y = y.transpose(0, 2, 1, 3).reshape(B, T, C)
    return y @ params["w_proj"] + params["b_proj"]


def _make_params(key, C, std=0.02):
    k1, k2, k3, k4 = jax.random.split(key, 4)
    return {
        "w_attn": std * jax.random.normal(k1, (C, 3 * C), dtype=jnp.float32),
        "b_attn": std * jax.random.normal(k2, (3 * C,), dtype=jnp.float32),
        "w_proj": std * jax.random.normal(k3, (C, C), dtype=jnp.float32),
        "b_proj": std * jax.random.normal(k4, (C,), dtype=jnp.float32),
    }


# ----------------------------------------------------------------------------
if __name__ == "__main__":
    # Small config: n_embd=32, n_head=4, T=8, bias=True, dropout=0.0.
    B, T, C, n_head = 2, 8, 32, 4

    key = jax.random.PRNGKey(0)
    kx, kp, kx2, kp2 = jax.random.split(key, 4)

    x = jax.random.normal(kx, (B, T, C), dtype=jnp.float32)
    params = _make_params(kp, C)

    fwd_bf16 = jax.jit(functools.partial(causal_self_attention,
                                         n_head=n_head, compute_dtype=jnp.bfloat16))
    fwd_f32 = jax.jit(functools.partial(causal_self_attention,
                                        n_head=n_head, compute_dtype=jnp.float32))

    y_bf16 = jax.block_until_ready(fwd_bf16(x, params))
    y_f32 = jax.block_until_ready(fwd_f32(x, params))
    y_ref = reference(x, params, n_head)

    assert y_bf16.shape == (B, T, C) and y_bf16.dtype == x.dtype
    # f32 compute path: near-exact (approx reciprocal + online softmax only).
    assert jnp.allclose(y_f32, y_ref, atol=2e-3, rtol=2e-3), "f32 path mismatch"
    # bf16 MXU operands (f32 accumulation / softmax state): looser tolerance.
    assert jnp.allclose(y_bf16, y_ref, atol=3e-2, rtol=3e-2), "bf16 path mismatch"

    # Second config exercising the multi-block lower-triangular flat grid
    # (T=512, block 256 -> 2 q blocks, 3 flat kv steps per head).
    B2, T2, C2, nh2 = 1, 512, 64, 2
    x2 = jax.random.normal(kx2, (B2, T2, C2), dtype=jnp.float32)
    params2 = _make_params(kp2, C2)
    fwd2 = jax.jit(functools.partial(causal_self_attention,
                                     n_head=nh2, compute_dtype=jnp.bfloat16))
    y2 = jax.block_until_ready(fwd2(x2, params2))
    y2_ref = reference(x2, params2, nh2)
    assert jnp.allclose(y2, y2_ref, atol=3e-2, rtol=3e-2), "multi-block mismatch"

    print("KERNEL_OK")
</pallas_src>

<mosaic_0001>
module attributes {stable_mosaic.version = 11 : i64} {
  func.func @_linear_kernel_fullk(%arg0: i32, %arg1: i32, %arg2: memref<16x32xbf16, #tpu.memory_space<vmem>>, %arg3: memref<32x96xbf16, #tpu.memory_space<vmem>>, %arg4: memref<1x96xf32, #tpu.memory_space<vmem>>, %arg5: memref<16x96xbf16, #tpu.memory_space<vmem>>) attributes {dimension_semantics = [#tpu.dimension_semantics<parallel>, #tpu.dimension_semantics<parallel>], iteration_bounds = array<i64: 1, 1>, scalar_prefetch = 0 : i64, scratch_operands = 0 : i64, tpu.core_type = #tpu.core_type<tc>, window_params = [{transform_indices = @transform_0, window_bounds = array<i64: 16, 32>}, {transform_indices = @transform_1, window_bounds = array<i64: 32, 96>}, {transform_indices = @transform_2, window_bounds = array<i64: 1, 96>}, {transform_indices = @transform_3, window_bounds = array<i64: 16, 96>}]} {
    %c0 = arith.constant 0 : index
    %c0_0 = arith.constant 0 : index
    %0 = vector.load %arg2[%c0, %c0_0] : memref<16x32xbf16, #tpu.memory_space<vmem>>, vector<16x32xbf16>
    %c0_1 = arith.constant 0 : index
    %c0_2 = arith.constant 0 : index
    %1 = vector.load %arg3[%c0_1, %c0_2] : memref<32x96xbf16, #tpu.memory_space<vmem>>, vector<32x96xbf16>
    %cst = arith.constant dense<0.000000e+00> : vector<16x96xf32>
    %2 = tpu.matmul %0, %1, %cst {dimension_numbers = #tpu.dot_dimension_numbers<[1], [0], [0], [1], [0, 0, 1, 1], [], []>} : vector<16x32xbf16>, vector<32x96xbf16>, vector<16x96xf32> -> vector<16x96xf32>
    %c0_3 = arith.constant 0 : index
    %c0_4 = arith.constant 0 : index
    %3 = vector.load %arg4[%c0_3, %c0_4] : memref<1x96xf32, #tpu.memory_space<vmem>>, vector<1x96xf32>
    %4 = vector.broadcast %3 : vector<1x96xf32> to vector<16x96xf32>
    %5 = arith.addf %2, %4 : vector<16x96xf32>
    %6 = arith.truncf %5 : vector<16x96xf32> to vector<16x96xbf16>
    %c0_5 = arith.constant 0 : index
    %c0_6 = arith.constant 0 : index
    %7 = vector.load %arg5[%c0_5, %c0_6] : memref<16x96xbf16, #tpu.memory_space<vmem>>, vector<16x96xbf16>
    tpu.vector_store %arg5[%c0_5, %c0_6], %6 {strides = array<i32>} : memref<16x96xbf16, #tpu.memory_space<vmem>>, vector<16x96xbf16>,
    return
  }
  func.func @transform_0(%arg0: i32, %arg1: i32) -> (i32, i32) {
    %c0_i32 = arith.constant 0 : i32
    %c0_i32_0 = arith.constant 0 : i32
    return %arg0, %c0_i32 : i32, i32
  }
  func.func @transform_1(%arg0: i32, %arg1: i32) -> (i32, i32) {
    %c0_i32 = arith.constant 0 : i32
    %c0_i32_0 = arith.constant 0 : i32
    return %c0_i32, %arg1 : i32, i32
  }
  func.func @transform_2(%arg0: i32, %arg1: i32) -> (i32, i32) {
    %c0_i32 = arith.constant 0 : i32
    %c0_i32_0 = arith.constant 0 : i32
    return %c0_i32, %arg1 : i32, i32
  }
  func.func @transform_3(%arg0: i32, %arg1: i32) -> (i32, i32) {
    %c0_i32 = arith.constant 0 : i32
    return %arg0, %arg1 : i32, i32
  }
}

module attributes {stable_mosaic.version = 11 : i64} {
  func.func @_flash_attn_kernel(%arg0: i32, %arg1: i32, %arg2: memref<1xi32, #tpu.memory_space<smem>>, %arg3: memref<1xi32, #tpu.memory_space<smem>>, %arg4: memref<1x8x8xbf16, #tpu.memory_space<vmem>>, %arg5: memref<1x8x8xbf16, #tpu.memory_space<vmem>>, %arg6: memref<1x8x8xbf16, #tpu.memory_space<vmem>>, %arg7: memref<1x8x8xbf16, #tpu.memory_space<vmem>>, %arg8: memref<8x1xf32, #tpu.memory_space<vmem>>, %arg9: memref<8x1xf32, #tpu.memory_space<vmem>>, %arg10: memref<8x8xf32, #tpu.memory_space<vmem>>, %arg11: memref<8x8xbf16, #tpu.memory_space<vmem>>) attributes {dimension_semantics = [#tpu.dimension_semantics<parallel>, #tpu.dimension_semantics<arbitrary>], iteration_bounds = array<i64: 8, 1>, scalar_prefetch = 2 : i64, scratch_operands = 4 : i64, tpu.core_type = #tpu.core_type<tc>, window_params = [{transform_indices = @transform_0, window_bounds = array<i64: 1, 8, 8>}, {transform_indices = @transform_1, window_bounds = array<i64: 1, 8, 8>}, {transform_indices = @transform_2, window_bounds = array<i64: 1, 8, 8>}, {transform_indices = @transform_3, window_bounds = array<i64: 1, 8, 8>}]} {
    %0 = arith.index_cast %arg1 : i32 to index
    %1 = memref.load %arg2[%0] : memref<1xi32, #tpu.memory_space<smem>>
    %2 = arith.index_cast %arg1 : i32 to index
    %3 = memref.load %arg3[%2] : memref<1xi32, #tpu.memory_space<smem>>
    %c0_i32 = arith.constant 0 : i32
    %4 = arith.cmpi eq, %3, %c0_i32 : i32
    %5 = arith.extui %4 : i1 to i32
    %c0_i32_0 = arith.constant 0 : i32
    %6 = arith.cmpi ne, %5, %c0_i32_0 : i32
    scf.if %6 {
      %cst_7 = arith.constant -1.000000e+30 : f32
      %17 = vector.broadcast %cst_7 : f32 to vector<8x1xf32>
      %c0_8 = arith.constant 0 : index
      %c0_9 = arith.constant 0 : index
      %18 = vector.load %arg8[%c0_8, %c0_9] : memref<8x1xf32, #tpu.memory_space<vmem>>, vector<8x1xf32>
      tpu.vector_store %arg8[%c0_8, %c0_9], %17 {strides = array<i32>} : memref<8x1xf32, #tpu.memory_space<vmem>>, vector<8x1xf32>,
      %cst_10 = arith.constant 0.000000e+00 : f32
      %19 = vector.broadcast %cst_10 : f32 to vector<8x1xf32>
      %c0_11 = arith.constant 0 : index
      %c0_12 = arith.constant 0 : index
      %20 = vector.load %arg9[%c0_11, %c0_12] : memref<8x1xf32, #tpu.memory_space<vmem>>, vector<8x1xf32>
      tpu.vector_store %arg9[%c0_11, %c0_12], %19 {strides = array<i32>} : memref<8x1xf32, #tpu.memory_space<vmem>>, vector<8x1xf32>,
      %cst_13 = arith.constant 0.000000e+00 : f32
      %21 = vector.broadcast %cst_13 : f32 to vector<8x8xf32>
      %c0_14 = arith.constant 0 : index
      %c0_15 = arith.constant 0 : index
      %22 = vector.load %arg10[%c0_14, %c0_15] : memref<8x8xf32, #tpu.memory_space<vmem>>, vector<8x8xf32>
      tpu.vector_store %arg10[%c0_14, %c0_15], %21 {strides = array<i32>} : memref<8x8xf32, #tpu.memory_space<vmem>>, vector<8x8xf32>,
      %c0_16 = arith.constant 0 : index
      %c0_17 = arith.constant 0 : index
      %c0_18 = arith.constant 0 : index
      %23 = vector.load %arg4[%c0_16, %c0_17, %c0_18] : memref<1x8x8xbf16, #tpu.memory_space<vmem>>, vector<1x8x8xbf16>
      %24 = vector.shape_cast %23 : vector<1x8x8xbf16> to vector<8x8xbf16>
      %25 = arith.extf %24 : vector<8x8xbf16> to vector<8x8xf32>
      %cst_19 = arith.constant 0.353553385 : f32
      %26 = vector.broadcast %cst_19 : f32 to vector<8x8xf32>
      %27 = arith.mulf %25, %26 : vector<8x8xf32>
      %28 = arith.truncf %27 : vector<8x8xf32> to vector<8x8xbf16>
      %c0_20 = arith.constant 0 : index
      %c0_21 = arith.constant 0 : index
      %29 = vector.load %arg11[%c0_20, %c0_21] : memref<8x8xbf16, #tpu.memory_space<vmem>>, vector<8x8xbf16>
      tpu.vector_store %arg11[%c0_20, %c0_21], %28 {strides = array<i32>} : memref<8x8xbf16, #tpu.memory_space<vmem>>, vector<8x8xbf16>,
    } else {
    }
    %c0 = arith.constant 0 : index
    %c0_1 = arith.constant 0 : index
    %7 = vector.load %arg11[%c0, %c0_1] : memref<8x8xbf16, #tpu.memory_space<vmem>>, vector<8x8xbf16>
    %c0_2 = arith.constant 0 : index
    %c0_3 = arith.constant 0 : index
    %c0_4 = arith.constant 0 : index
    %8 = vector.load %arg5[%c0_2, %c0_3, %c0_4] : memref<1x8x8xbf16, #tpu.memory_space<vmem>>, vector<1x8x8xbf16>
    %9 = vector.shape_cast %8 : vector<1x8x8xbf16> to vector<8x8xbf16>
    %cst = arith.constant dense<0.000000e+00> : vector<8x8xf32>
    %10 = tpu.matmul %7, %9, %cst {dimension_numbers = #tpu.dot_dimension_numbers<[1], [1], [0], [0], [0, 0, 1, 0], [], []>} : vector<8x8xbf16>, vector<8x8xbf16>, vector<8x8xf32> -> vector<8x8xf32>
    %11 = arith.cmpi slt, %3, %1 : i32
    %12 = arith.extui %11 : i1 to i32
    %c0_i32_5 = arith.constant 0 : i32
    %13 = arith.cmpi ne, %12, %c0_i32_5 : i32
    scf.if %13 {
      %c0_7 = arith.constant 0 : index
      %c0_8 = arith.constant 0 : index
      %17 = vector.load %arg8[%c0_7, %c0_8] : memref<8x1xf32, #tpu.memory_space<vmem>>, vector<8x1xf32>
      %cst_9 = arith.constant dense<0xFF800000> : vector<8xf32>
      %18 = vector.multi_reduction <maximumf>, %10, %cst_9 [1] : vector<8x8xf32> to vector<8xf32>
      %19 = vector.shape_cast %18 : vector<8xf32> to vector<8x1xf32>
      %20 = arith.maximumf %17, %19 : vector<8x1xf32>
      %21 = arith.subf %17, %20 : vector<8x1xf32>
      %22 = math.exp %21 : vector<8x1xf32>
      %23 = vector.broadcast %20 : vector<8x1xf32> to vector<8x8xf32>
      %24 = arith.subf %10, %23 : vector<8x8xf32>
      %25 = math.exp %24 : vector<8x8xf32>
      %c0_10 = arith.constant 0 : index
      %c0_11 = arith.constant 0 : index
      %26 = vector.load %arg9[%c0_10, %c0_11] : memref<8x1xf32, #tpu.memory_space<vmem>>, vector<8x1xf32>
      %27 = arith.mulf %22, %26 : vector<8x1xf32>
      %cst_12 = arith.constant dense<0.000000e+00> : vector<8xf32>
      %28 = vector.multi_reduction <add>, %25, %cst_12 [1] : vector<8x8xf32> to vector<8xf32>
      %29 = vector.shape_cast %28 : vector<8xf32> to vector<8x1xf32>
      %30 = arith.addf %27, %29 : vector<8x1xf32>
      %c0_13 = arith.constant 0 : index
      %c0_14 = arith.constant 0 : index
      %31 = vector.load %arg9[%c0_13, %c0_14] : memref<8x1xf32, #tpu.memory_space<vmem>>, vector<8x1xf32>
      tpu.vector_store %arg9[%c0_13, %c0_14], %30 {strides = array<i32>} : memref<8x1xf32, #tpu.memory_space<vmem>>, vector<8x1xf32>,
      %c0_15 = arith.constant 0 : index
      %c0_16 = arith.constant 0 : index
      %32 = vector.load %arg10[%c0_15, %c0_16] : memref<8x8xf32, #tpu.memory_space<vmem>>, vector<8x8xf32>
      %33 = vector.broadcast %22 : vector<8x1xf32> to vector<8x8xf32>
      %34 = arith.mulf %33, %32 : vector<8x8xf32>
      %35 = arith.truncf %25 : vector<8x8xf32> to vector<8x8xbf16>
      %c0_17 = arith.constant 0 : index
      %c0_18 = arith.constant 0 : index
      %c0_19 = arith.constant 0 : index
      %36 = vector.load %arg6[%c0_17, %c0_18, %c0_19] : memref<1x8x8xbf16, #tpu.memory_space<vmem>>, vector<1x8x8xbf16>
      %37 = vector.shape_cast %36 : vector<1x8x8xbf16> to vector<8x8xbf16>
      %cst_20 = arith.constant dense<0.000000e+00> : vector<8x8xf32>
      %38 = tpu.matmul %35, %37, %cst_20 {dimension_numbers = #tpu.dot_dimension_numbers<[1], [0], [0], [1], [0, 0, 1, 1], [], []>} : vector<8x8xbf16>, vector<8x8xbf16>, vector<8x8xf32> -> vector<8x8xf32>
      %39 = arith.addf %34, %38 : vector<8x8xf32>
      %c0_21 = arith.constant 0 : index
      %c0_22 = arith.constant 0 : index
      %40 = vector.load %arg10[%c0_21, %c0_22] : memref<8x8xf32, #tpu.memory_space<vmem>>, vector<8x8xf32>
      tpu.vector_store %arg10[%c0_21, %c0_22], %39 {strides = array<i32>} : memref<8x8xf32, #tpu.memory_space<vmem>>, vector<8x8xf32>,
      %c0_23 = arith.constant 0 : index
      %c0_24 = arith.constant 0 : index
      %41 = vector.load %arg8[%c0_23, %c0_24] : memref<8x1xf32, #tpu.memory_space<vmem>>, vector<8x1xf32>
      tpu.vector_store %arg8[%c0_23, %c0_24], %20 {strides = array<i32>} : memref<8x1xf32, #tpu.memory_space<vmem>>, vector<8x1xf32>,
    } else {
    }
    %14 = arith.cmpi eq, %3, %1 : i32
    %15 = arith.extui %14 : i1 to i32
    %c0_i32_6 = arith.constant 0 : i32
    %16 = arith.cmpi ne, %15, %c0_i32_6 : i32
    scf.if %16 {
      %17 = tpu.iota {dimensions = array<i32: 0>} : vector<8x8xi32>
      %18 = tpu.iota {dimensions = array<i32: 1>} : vector<8x8xi32>
      %19 = arith.cmpi sle, %18, %17 : vector<8x8xi32>
      %cst_7 = arith.constant -1.000000e+30 : f32
      %20 = vector.broadcast %cst_7 : f32 to vector<8x8xf32>
      %21 = arith.select %19, %10, %20 : vector<8x8xi1>, vector<8x8xf32>
      %c0_8 = arith.constant 0 : index
      %c0_9 = arith.constant 0 : index
      %22 = vector.load %arg8[%c0_8, %c0_9] : memref<8x1xf32, #tpu.memory_space<vmem>>, vector<8x1xf32>
      %cst_10 = arith.constant dense<0xFF800000> : vector<8xf32>
      %23 = vector.multi_reduction <maximumf>, %21, %cst_10 [1] : vector<8x8xf32> to vector<8xf32>
      %24 = vector.shape_cast %23 : vector<8xf32> to vector<8x1xf32>
      %25 = arith.maximumf %22, %24 : vector<8x1xf32>
      %26 = arith.subf %22, %25 : vector<8x1xf32>
      %27 = math.exp %26 : vector<8x1xf32>
      %28 = vector.broadcast %25 : vector<8x1xf32> to vector<8x8xf32>
      %29 = arith.subf %21, %28 : vector<8x8xf32>
      %30 = math.exp %29 : vector<8x8xf32>
      %c0_11 = arith.constant 0 : index
      %c0_12 = arith.constant 0 : index
      %31 = vector.load %arg9[%c0_11, %c0_12] : memref<8x1xf32, #tpu.memory_space<vmem>>, vector<8x1xf32>
      %32 = arith.mulf %27, %31 : vector<8x1xf32>
      %cst_13 = arith.constant dense<0.000000e+00> : vector<8xf32>
      %33 = vector.multi_reduction <add>, %30, %cst_13 [1] : vector<8x8xf32> to vector<8xf32>
      %34 = vector.shape_cast %33 : vector<8xf32> to vector<8x1xf32>
      %35 = arith.addf %32, %34 : vector<8x1xf32>
      %c0_14 = arith.constant 0 : index
      %c0_15 = arith.constant 0 : index
      %36 = vector.load %arg9[%c0_14, %c0_15] : memref<8x1xf32, #tpu.memory_space<vmem>>, vector<8x1xf32>
      tpu.vector_store %arg9[%c0_14, %c0_15], %35 {strides = array<i32>} : memref<8x1xf32, #tpu.memory_space<vmem>>, vector<8x1xf32>,
      %c0_16 = arith.constant 0 : index
      %c0_17 = arith.constant 0 : index
      %37 = vector.load %arg10[%c0_16, %c0_17] : memref<8x8xf32, #tpu.memory_space<vmem>>, vector<8x8xf32>
      %38 = vector.broadcast %27 : vector<8x1xf32> to vector<8x8xf32>
      %39 = arith.mulf %38, %37 : vector<8x8xf32>
      %40 = arith.truncf %30 : vector<8x8xf32> to vector<8x8xbf16>
      %c0_18 = arith.constant 0 : index
      %c0_19 = arith.constant 0 : index
      %c0_20 = arith.constant 0 : index
      %41 = vector.load %arg6[%c0_18, %c0_19, %c0_20] : memref<1x8x8xbf16, #tpu.memory_space<vmem>>, vector<1x8x8xbf16>
      %42 = vector.shape_cast %41 : vector<1x8x8xbf16> to vector<8x8xbf16>
      %cst_21 = arith.constant dense<0.000000e+00> : vector<8x8xf32>
      %43 = tpu.matmul %40, %42, %cst_21 {dimension_numbers = #tpu.dot_dimension_numbers<[1], [0], [0], [1], [0, 0, 1, 1], [], []>} : vector<8x8xbf16>, vector<8x8xbf16>, vector<8x8xf32> -> vector<8x8xf32>
      %44 = arith.addf %39, %43 : vector<8x8xf32>
      %c0_22 = arith.constant 0 : index
      %c0_23 = arith.constant 0 : index
      %45 = vector.load %arg10[%c0_22, %c0_23] : memref<8x8xf32, #tpu.memory_space<vmem>>, vector<8x8xf32>
      tpu.vector_store %arg10[%c0_22, %c0_23], %44 {strides = array<i32>} : memref<8x8xf32, #tpu.memory_space<vmem>>, vector<8x8xf32>,
      %c0_24 = arith.constant 0 : index
      %c0_25 = arith.constant 0 : index
      %46 = vector.load %arg8[%c0_24, %c0_25] : memref<8x1xf32, #tpu.memory_space<vmem>>, vector<8x1xf32>
      tpu.vector_store %arg8[%c0_24, %c0_25], %25 {strides = array<i32>} : memref<8x1xf32, #tpu.memory_space<vmem>>, vector<8x1xf32>,
      %c0_26 = arith.constant 0 : index
      %c0_27 = arith.constant 0 : index
      %47 = vector.load %arg9[%c0_26, %c0_27] : memref<8x1xf32, #tpu.memory_space<vmem>>, vector<8x1xf32>
      %48 = tpu.reciprocal %47 {approx = true} : vector<8x1xf32> -> vector<8x1xf32>
      %c0_28 = arith.constant 0 : index
      %c0_29 = arith.constant 0 : index
      %49 = vector.load %arg10[%c0_28, %c0_29] : memref<8x8xf32, #tpu.memory_space<vmem>>, vector<8x8xf32>
      %50 = vector.broadcast %48 : vector<8x1xf32> to vector<8x8xf32>
      %51 = arith.mulf %49, %50 : vector<8x8xf32>
      %52 = arith.truncf %51 : vector<8x8xf32> to vector<8x8xbf16>
      %c0_30 = arith.constant 0 : index
      %c0_31 = arith.constant 0 : index
      %c0_32 = arith.constant 0 : index
      %53 = vector.load %arg7[%c0_30, %c0_31, %c0_32] : memref<1x8x8xbf16, #tpu.memory_space<vmem>>, vector<1x8x8xbf16>
      %54 = vector.shape_cast %53 : vector<1x8x8xbf16> to vector<8x8xbf16>
      %55 = vector.shape_cast %52 : vector<8x8xbf16> to vector<1x8x8xbf16>
      tpu.vector_store %arg7[%c0_30, %c0_31, %c0_32], %55 {strides = array<i32>} : memref<1x8x8xbf16, #tpu.memory_space<vmem>>, vector<1x8x8xbf16>,
    } else {
    }
    return
  }
  func.func @transform_0(%arg0: i32, %arg1: i32, %arg2: memref<1xi32, #tpu.memory_space<smem>>, %arg3: memref<1xi32, #tpu.memory_space<smem>>) -> (i32, i32, i32) {
    %0 = arith.index_cast %arg1 : i32 to index
    %1 = memref.load %arg2[%0] : memref<1xi32, #tpu.memory_space<smem>>
    %c0_i32 = arith.constant 0 : i32
    %c0_i32_0 = arith.constant 0 : i32
    return %arg0, %1, %c0_i32 : i32, i32, i32
  }
  func.func @transform_1(%arg0: i32, %arg1: i32, %arg2: memref<1xi32, #tpu.memory_space<smem>>, %arg3: memref<1xi32, #tpu.memory_space<smem>>) -> (i32, i32, i32) {
    %0 = arith.index_cast %arg1 : i32 to index
    %1 = memref.load %arg3[%0] : memref<1xi32, #tpu.memory_space<smem>>
    %c0_i32 = arith.constant 0 : i32
    %c0_i32_0 = arith.constant 0 : i32
    return %arg0, %1, %c0_i32 : i32, i32, i32
  }
  func.func @transform_2(%arg0: i32, %arg1: i32, %arg2: memref<1xi32, #tpu.memory_space<smem>>, %arg3: memref<1xi32, #tpu.memory_space<smem>>) -> (i32, i32, i32) {
    %0 = arith.index_cast %arg1 : i32 to index
    %1 = memref.load %arg3[%0] : memref<1xi32, #tpu.memory_space<smem>>
    %c0_i32 = arith.constant 0 : i32
    %c0_i32_0 = arith.constant 0 : i32
    return %arg0, %1, %c0_i32 : i32, i32, i32
  }
  func.func @transform_3(%arg0: i32, %arg1: i32, %arg2: memref<1xi32, #tpu.memory_space<smem>>, %arg3: memref<1xi32, #tpu.memory_space<smem>>) -> (i32, i32, i32) {
    %0 = arith.index_cast %arg1 : i32 to index
    %1 = memref.load %arg2[%0] : memref<1xi32, #tpu.memory_space<smem>>
    %c0_i32 = arith.constant 0 : i32
    %c0_i32_0 = arith.constant 0 : i32
    return %arg0, %1, %c0_i32 : i32, i32, i32
  }
}

module attributes {stable_mosaic.version = 11 : i64} {
  func.func @_linear_kernel_fullk(%arg0: i32, %arg1: i32, %arg2: memref<16x32xbf16, #tpu.memory_space<vmem>>, %arg3: memref<32x32xbf16, #tpu.memory_space<vmem>>, %arg4: memref<1x32xf32, #tpu.memory_space<vmem>>, %arg5: memref<16x32xf32, #tpu.memory_space<vmem>>) attributes {dimension_semantics = [#tpu.dimension_semantics<parallel>, #tpu.dimension_semantics<parallel>], iteration_bounds = array<i64: 1, 1>, scalar_prefetch = 0 : i64, scratch_operands = 0 : i64, tpu.core_type = #tpu.core_type<tc>, window_params = [{transform_indices = @transform_0, window_bounds = array<i64: 16, 32>}, {transform_indices = @transform_1, window_bounds = array<i64: 32, 32>}, {transform_indices = @transform_2, window_bounds = array<i64: 1, 32>}, {transform_indices = @transform_3, window_bounds = array<i64: 16, 32>}]} {
    %c0 = arith.constant 0 : index
    %c0_0 = arith.constant 0 : index
    %0 = vector.load %arg2[%c0, %c0_0] : memref<16x32xbf16, #tpu.memory_space<vmem>>, vector<16x32xbf16>
    %c0_1 = arith.constant 0 : index
    %c0_2 = arith.constant 0 : index
    %1 = vector.load %arg3[%c0_1, %c0_2] : memref<32x32xbf16, #tpu.memory_space<vmem>>, vector<32x32xbf16>
    %cst = arith.constant dense<0.000000e+00> : vector<16x32xf32>
    %2 = tpu.matmul %0, %1, %cst {dimension_numbers = #tpu.dot_dimension_numbers<[1], [0], [0], [1], [0, 0, 1, 1], [], []>} : vector<16x32xbf16>, vector<32x32xbf16>, vector<16x32xf32> -> vector<16x32xf32>
    %c0_3 = arith.constant 0 : index
    %c0_4 = arith.constant 0 : index
    %3 = vector.load %arg4[%c0_3, %c0_4] : memref<1x32xf32, #tpu.memory_space<vmem>>, vector<1x32xf32>
    %4 = vector.broadcast %3 : vector<1x32xf32> to vector<16x32xf32>
    %5 = arith.addf %2, %4 : vector<16x32xf32>
    %c0_5 = arith.constant 0 : index
    %c0_6 = arith.constant 0 : index
    %6 = vector.load %arg5[%c0_5, %c0_6] : memref<16x32xf32, #tpu.memory_space<vmem>>, vector<16x32xf32>
    tpu.vector_store %arg5[%c0_5, %c0_6], %5 {strides = array<i32>} : memref<16x32xf32, #tpu.memory_space<vmem>>, vector<16x32xf32>,
    return
  }
  func.func @transform_0(%arg0: i32, %arg1: i32) -> (i32, i32) {
    %c0_i32 = arith.constant 0 : i32
    %c0_i32_0 = arith.constant 0 : i32
    return %arg0, %c0_i32 : i32, i32
  }
  func.func @transform_1(%arg0: i32, %arg1: i32) -> (i32, i32) {
    %c0_i32 = arith.constant 0 : i32
    %c0_i32_0 = arith.constant 0 : i32
    return %c0_i32, %arg1 : i32, i32
  }
  func.func @transform_2(%arg0: i32, %arg1: i32) -> (i32, i32) {
    %c0_i32 = arith.constant 0 : i32
    %c0_i32_0 = arith.constant 0 : i32
    return %c0_i32, %arg1 : i32, i32
  }
  func.func @transform_3(%arg0: i32, %arg1: i32) -> (i32, i32) {
    %c0_i32 = arith.constant 0 : i32
    return %arg0, %arg1 : i32, i32
  }
}

</mosaic_0001>

<bundles_post_ra>
// kernel: causal_self_attention.3
= control target key start
LH: loop header
LB: loop body
LE: loop exit
PB: predicated region body
PF: predicated region fallthrough
CT: control target
= control target key end

     0   :  { %v130_v0 = vmov 0.0   ;;  %vm131_vm0 = vmmov 0   ;;  %vm45_vm1 = vcmask 261120   ;;  %vm98_vm2 = vcmask 781312   ;;  %s170_s1 = inlined_call_operand.vmem [shape: bf16[32,96], index: 1, kind: input, shape index: {}]   ;;  %s171_s0 = inlined_call_operand.vmem [shape: bf16[16,32], index: 0, kind: input, shape index: {}]   ;;  %s172_s2 = inlined_call_operand.vmem [shape: f32[1,96], index: 2, kind: input, shape index: {}]   ;;  %s173_s3 = inlined_call_operand.vmem [shape: bf16[16,96], index: 3, kind: output, shape index: {}]  }
   0x1   :  { %117 = vmatprep.subr.bf16.mxu0 %v130_v0  ;;  %v127_v1 = vld [vmem:[%s170_s1] sm:$0xff]   ;;  %121 = vmatprep.mubr.msk.bf16.mxu0 %vm131_vm0, %v130_v0  ;;  %v128_v2 = vld [vmem:[%s170_s1 + $0x8] sm:$0xff]  }
   0x2   :  { %118 = vmatpush3.bf16.msra.mxu0 %v127_v1  ;;  %v129_v3 = vld [vmem:[%s171_s0] sm:$0xff]  }
   0x3   :  { %119 = vmatprep.subr.bf16.mxu0 %v130_v0  ;;  %v105_v4 = vld [vmem:[%s172_s2] ss:$0 sm:$0xff] }
   0x6   :  { %120 = vmatpush3.bf16.msra.mxu0 %v128_v2 }
   0x9   :  { %122 = vmatmul.mubr.msk.bf16.vlgmr.msra.gmra.mrb[0].mxu0 %vm45_vm1, %v129_v3 }
  0xdc   :  { %v83_v5 = vpop.f32.mrb[0].mxu0 }
  0xdd   :  { %v84_v6 = vadd.f32 %v105_v4, %v83_v5  ;;  %v123_v7 = vpop.f32.mrb[1].mxu0 }
  0xde   :  { %v86_v8 = vpop.f32.mrb[2].mxu0 }
  0xdf   :  { %v112_v9 = vpack.c.bf16 %v84_v6, %v84_v6  ;;  %v87_v10 = vadd.f32 %v105_v4, %v86_v8  ;;  %v124_v11 = vpop.f32.mrb[3].mxu0 }
  0xe1   :  { %99 = vst.msk [vmem:[%s173_s3] sm:$0xf] %vm98_vm2, %v112_v9  ;;  %v113_v12 = vpack.c.bf16 %v87_v10, %v87_v10 }
  0xe3   :  { %100 = vst.msk [vmem:[%s173_s3 + $0x4] sm:$0xf] %vm98_vm2, %v113_v12 }

// kernel: causal_self_attention.5
= control target key start
LH: loop header
LB: loop body
LE: loop exit
PB: predicated region body
PF: predicated region fallthrough
CT: control target
= control target key end

     0   :  { %v157_v1 = vmov 0.0   ;;  %vm158_vm0 = vmmov 0   ;;  %s206_s0 = inlined_call_operand.vmem [shape: bf16[16,32], index: 0, kind: input, shape index: {}]   ;;  %s207_s1 = inlined_call_operand.vmem [shape: bf16[32,32], index: 1, kind: input, shape index: {}]   ;;  %s208_s2 = inlined_call_operand.vmem [shape: f32[1,32], index: 2, kind: input, shape index: {}]   ;;  %s209_s3 = inlined_call_operand.hbm [shape: f32[16,32], index: 3, kind: output, shape index: {}]  }
   0x1   :  { %v130_v0 = vld [vmem:[%s207_s1] sm:$0xff]   ;;  %117 = vmatprep.subr.bf16.mxu0 %v157_v1  ;;  %v131_v2 = vld [vmem:[%s207_s1 + $0x8] sm:$0xff]   ;;  %121 = vmatprep.mubr.msk.bf16.mxu0 %vm158_vm0, %v157_v1 }
   0x2   :  { %118 = vmatpush3.bf16.msra.mxu0 %v130_v0 }
   0x3   :  { %119 = vmatprep.subr.bf16.mxu0 %v157_v1 }
   0x4   :  { %8 = vsyncpa [#allocation3], 0  ;;  %v132_v3 = vld [vmem:[%s206_s0] sm:$0xff]   ;;  %vm46_vm1 = vcmask 261120   ;;  %s159_s20 = smov [#allocation2]  }
   0x5   :  { %v109_v4 = vld [vmem:[%s208_s2] ss:$0 sm:$0xff]  ;;  %s98_s21 = sshll.u32 %s159_s20, 4  ;;  %s99_s21 = int_to_ptr.vmem [resolvable:$true] %s98_s21 }
   0x6   :  { %120 = vmatpush3.bf16.msra.mxu0 %v131_v2  ;;  %s133_s1 = scalar_lea.vmem %s99_s21, 256  ;;  %p138_p1 = scmp.lt.s32.totalorder %s99_s21, %s99_s21 }
   0x7   :  { %p134_p0 = scmp.ne.s32.totalorder %s99_s21, %s133_s1  ;;  %p139_p2 = scmp.lt.s32.totalorder %s133_s1, %s133_s1 }
   0x9   :  { %122 = vmatmul.mubr.msk.bf16.vlgmr.msra.gmra.mrb[0].mxu0 %vm46_vm1, %v132_v3  ;;  %p140_p3 = por %p139_p2, %p138_p1 }
   0xb   :  { %p141_p4 = pnand %p140_p3, %p134_p0 }
  0xdc   :  { %v84_v5 = vpop.f32.mrb[0].mxu0 }
  0xdd   :  { %v85_v6 = vadd.f32 %v109_v4, %v84_v5  ;;  %v123_v7 = vpop.f32.mrb[1].mxu0 }
  0xde   :  { %v87_v8 = vpop.f32.mrb[2].mxu0 }
  0xdf   :  { %91 = vst.msk [vmem:[#allocation2] sm:$0xff] %vm46_vm1, %v85_v6  ;;  %v88_v9 = vadd.f32 %v109_v4, %v87_v8  ;;  %v124_v10 = vpop.f32.mrb[3].mxu0 }
  0xe1   :  { %92 = vst.msk [vmem:[#allocation2 + $0x8] sm:$0xff] %vm46_vm1, %v88_v9 }
  0xe2   :  { %144 = shalt.err (!%p141_p4)
}
  0xe3   :  { %s145_s22 = scalar_lea.hbm %s209_s3, 256 }
  0xe4   :  { %p146_p5 = scmp.ne.s32.totalorder %s209_s3, %s145_s22  ;;  %p149_p6 = scmp.lt.u32.totalorder %s145_s22, %s209_s3 }
  0xe6   :  { %p151_p7 = pnand %p149_p6, %p146_p5 }
  0xe8   :  { %154 = shalt.err (!%p151_p7)
}
  0xe9   :  { %s160_s27 = smov 128   ;;  %s161_s28 = smov 8  }
  0xea   :  { %104 = dma.vmem_to_hbm [thread:$0]  %s99_s21, 256, %s209_s3, [#allocation3], %s160_s27, %s160_s27, %s161_s28  }
  0xeb   :  { %155 = dma.done.wait [#allocation3], 256  }
  0xec   :  { %156 = vsyncadd [#allocation3], 4294967040 }
  0xed   :  { %108 = vsyncpa [#allocation3], 1 }

// kernel: causal_self_attention.4
= control target key start
LH: loop header
LB: loop body
LE: loop exit
PB: predicated region body
PF: predicated region fallthrough
CT: control target
= control target key end

     0   :  { %s809_s22 = smov 0   ;;  %s811_s23 = smov 0   ;;  %s888_s0 = inlined_call_operand.<no memory space> [shape: s32[1], index: 0, kind: input, shape index: {}, may-alias: {0,1}]   ;;  %s889_s1 = inlined_call_operand.<no memory space> [shape: s32[1], index: 1, kind: input, shape index: {}, may-alias: {0,1}]   ;;  %s890_s2 = inlined_call_operand.vmem [shape: bf16[8,8,8], index: 2, kind: input, shape index: {}]   ;;  %s891_s3 = inlined_call_operand.vmem [shape: bf16[8,8,8], index: 3, kind: input, shape index: {}]   ;;  %s892_s4 = inlined_call_operand.vmem [shape: bf16[8,8,8], index: 4, kind: input, shape index: {}]   ;;  %s893_s5 = inlined_call_operand.vmem [shape: bf16[8,8,8], index: 5, kind: output, shape index: {}]  }
   0x1   :  { %10 = sst [smem:[#allocation7]] %s888_s0  ;;  %s813_s24 = smov 0  }
   0x2   :  { %11 = sst [smem:[#allocation8]] %s889_s1 }
   0x3 LB: > { %s29_s0 = sadd.s32 1, %s757_s23  ;;  %p654_p0 = scmp.ge.s32.totalorder %s761_s24, 1  ;;  %s761_s24 = sphi %s813_s24, %s17_s24   ;;  %s757_s23 = sphi %s811_s23, %s895_s23   ;;  %s753_s22 = sphi %s809_s22, %s894_s22  }
   0x4   : > { %p31_p1 = scmp.ge.s32.totalorder %s29_s0, 8  ;;  %p201_p2 = scmp.lt.s32.totalorder %s761_s24, 9 }
   0x6   : > { %s897_s0 = smov (%p31_p1, %s29_s0), 0  ;;  %p202_p3 = pnand %p654_p0, %p201_p2 }
   0x7   : > { %s827_s1 = sld [smem:[#allocation7]] (!%p202_p3)  ;;  %p248_p4 = scmp.lt.s32.totalorder (!%p202_p3), %s753_s22, 7 }
   0x8   : > { %205 = sbr.rel (%p202_p3) target bundleno = 1347 (0x543), region = 32  ;;  %s829_s25 = sld [smem:[#allocation8]] (!%p202_p3) }
   0xd   : > { %p250_p5 = scmp.lt.s32.totalorder (!%p202_p3), %s827_s1, 0 }
   0xe   : > { %p259_p6 = scmp.lt.s32.totalorder (!%p202_p3), %s829_s25, 0  ;;  %p659_p7 = scmp.ne.s32.totalorder (!%p202_p3), %s829_s25, 0 }
   0xf   : > { %s899_s22 = smov (!%p248_p4, %s753_s22), 7  ;;  %vm290_vm0 = vcmask (!%p659_p7), 7168   ;;  %vm293_vm1 = vcmask (!%p659_p7), 64512   ;;  %v763_v0 = vmov (!%p659_p7), -1e+30   ;;  %v764_v1 = vmov (!%p659_p7), 0.0  }
  0x10   : > { %s251_s26 = scalar_select %p250_p5, %s827_s1, 0 }
  0x11   : > { %s260_s27 = scalar_select %p259_p6, %s829_s25, 0 }
  0x12   : > { %s252_s28 = sadd.s32 %s251_s26, %s899_s22  ;;  %289 = sbr.rel (%p659_p7) target bundleno = 29 (0x1d), region = 36  ;;  %291 = vst.msk [vmem:[#allocation2] sm:$0xff] (!%p659_p7), %vm290_vm0, %v763_v0  ;;  %292 = vst.msk [vmem:[#allocation3] sm:$0xff] (!%p659_p7), %vm290_vm0, %v764_v1  ;;  %vm299_vm2 = vcmask (!%p659_p7), 60416  }
  0x13   : > { %s835_s29 = sshll.u32 %s252_s28, 2  ;;  %s261_s30 = sadd.s32 %s260_s27, %s899_s22  ;;  %294 = vst.msk [vmem:[#allocation4] sm:$0xff] (!%p659_p7), %vm293_vm1, %v764_v1 }
  0x14   : > { %s254_s8 = scalar_lea.vmem %s890_s2, %s835_s29  ;;  %s656_s9 = sshll.u32 %s261_s30, 2 }
  0x15   : > { %s263_s12 = scalar_lea.vmem %s891_s3, %s656_s9  ;;  %s847_s15 = scalar_lea.vmem %s892_s4, %s656_s9  ;;  %v295_v2 = vld [vmem:[%s254_s8] sm:$0xf] (!%p659_p7) }
  0x16   : > { %s281_s18 = scalar_lea.vmem %s893_s5, %s835_s29  ;;  %v296_v3 = vunpack.c.l.bf16 (!%p659_p7), %v295_v2 }
  0x18   : > { %v297_v4 = vmul.f32 (!%p659_p7), 0.35355338, %v296_v3 }
  0x1a   : > { %v298_v5 = vpack.c.bf16 %v297_v4, %v297_v4 }
  0x1c   : > { %300 = vst.msk [vmem:[#allocation5] sm:$0xf] %vm299_vm2, %v298_v5 }
  0x1d PF: > { %v302_v6 = vld [vmem:[%s263_s12] sm:$0xf]  ;;  %vm303_vm3 = vcmask 64512   ;;  %v765_v7 = vmov 0.0   ;;  %vm766_vm4 = vmmov 0   ;;  %p661_p8 = scmp.ge.s32.totalorder %s829_s25, %s827_s1 }
  0x1e   : > { %673 = vmatprep.subr.bf16.mxu0 %v765_v7  ;;  %v308_v8 = vsel %vm303_vm3, %v302_v6, 0  ;;  %675 = vmatprep.mubr.msk.bf16.mxu0 %vm766_vm4, %v765_v7  ;;  %v767_v15 = vmov (!%p661_p8), 0   ;;  %v354_v16 = vld [vmem:[#allocation2] sm:$0xff] (!%p661_p8)  ;;  %vm376_vm5 = vcmask (!%p661_p8), 7168   ;;  %vm390_vm6 = vcmask (!%p661_p8), 1043456   ;;  %v370_v31 = vld [vmem:[#allocation3] sm:$0xff] (!%p661_p8) }
  0x1f   : > { %674 = vmatpush3.bf16.xpose.msra.mxu0 %v308_v8  ;;  %725 = vset.pattern.permute.xlu0 (!%p661_p8), %v767_v15  ;;  %v386_v20 = vld [vmem:[%s847_s15] sm:$0xf] (!%p661_p8)  ;;  %v768_v21 = vmov (!%p661_p8), 0.0   ;;  %vm769_vm7 = vmmov (!%p661_p8), 0   ;;  %v378_v35 = vld [vmem:[#allocation4] sm:$0xff] (!%p661_p8) }
  0x20   : > { %726 = vset.pattern.permute.xlu1 (!%p661_p8), %v767_v15  ;;  %679 = vmatprep.subr.bf16.mxu0 (!%p661_p8), %v768_v21  ;;  %v392_v22 = vsel (!%p661_p8), %vm390_vm6, %v386_v20, 0 }
  0x23   : > { %v301_v9 = vld [vmem:[#allocation5] sm:$0xf] }
  0x26   : > { %676 = vmatmul.mubr.msk.bf16.vlgmr.msra.gmra.mrb[0].mxu0 %vm303_vm3, %v301_v9 }
  0x27   : > { %681 = vmatprep.mubr.msk.bf16.mxu0 (!%p661_p8), %vm769_vm7, %v768_v21  ;;  %680 = vmatpush3.bf16.msra.mxu0 (!%p661_p8), %v392_v22 }
  0xf6   : > { %353 = sbr.rel (%p661_p8) target bundleno = 755 (0x2f3), region = 40 }
  0xf9   : > { %v344_v10 = vpop.f32.mrb[0].mxu0 }
  0xfa   : > { %v677_v11 = vpop.f32.mrb[1].mxu0  ;;  %v355_v14 = vsel (!%p661_p8), %vm303_vm3, %v344_v10, -inf }
  0xfb   : > { %v347_v12 = vpop.f32.mrb[2].mxu0  ;;  %356 = vmax.xlane.f32.xlu0 (!%p661_p8), %v355_v14 }
  0xfc   : > { %v678_v13 = vpop.f32.mrb[3].mxu0 }
 0x188   : > { %v357_v17 = vpop.xlane.xlu0 %356 }
 0x189   : > { %v358_v18 = vmax.f32 %v354_v16, %v357_v17 }
 0x18b   : > { %v359_v19 = vsub.f32 %v354_v16, %v358_v18  ;;  %436 = vst.msk [vmem:[#allocation2] sm:$0xff] %vm376_vm5, %v358_v18  ;;  %364 = vperm.xlu0 %725, %v358_v18  }
 0x18d   : > { %v360_v29 = vmul.f32 1.442695, %v359_v19 }
 0x20a   : > { %v365_v23 = vpop.permute.xlu0 %364 }
 0x20b   : > { %v367_v24 = vsub.f32 %v344_v10, %v365_v23 }
 0x20d   : > { %v368_v25 = vmul.f32 1.442695, %v367_v24 }
 0x20f   : > { %727 = vpow2.f32 %v368_v25 }
 0x210   : > { %729 = vpow2.f32 %v360_v29 }
 0x219   : > { %v728_v26 = vpop.eup %727 }
 0x21a   : > { %v372_v27 = vsel %vm303_vm3, %v728_v26, 0.0  ;;  %v385_v28 = vpack.c.bf16 %v728_v26, %v728_v26  ;;  %v730_v30 = vpop.eup %729 }
 0x21b   : > { %373 = vadd.xlane.f32.xlu1 %v372_v27  ;;  %v371_v32 = vmul.f32 %v730_v30, %v370_v31 }
 0x21c   : > { %682 = vmatmul.mubr.msk.bf16.vlgmr.msra.gmra.mrb[0].mxu0 %vm303_vm3, %v385_v28 }
 0x22c   : > { %381 = vperm.xlu1 %726, %v730_v30  }
 0x2a8   : > { %v374_v33 = vpop.xlane.xlu1 %373 }
 0x2a9   : > { %v375_v34 = vadd.f32 %v374_v33, %v371_v32 }
 0x2ab   : > { %377 = vst.msk [vmem:[#allocation3] sm:$0xff] %vm376_vm5, %v375_v34 }
 0x2ac   : > { %v382_v36 = vpop.permute.xlu1 %381 }
 0x2ad   : > { %v384_v37 = vmul.f32 %v382_v36, %v378_v35 }
 0x2ef   : > { %v428_v38 = vpop.f32.mrb[0].mxu0 }
 0x2f0   : > { %v434_v39 = vadd.f32 %v428_v38, %v384_v37  ;;  %v683_v40 = vpop.f32.mrb[1].mxu0 }
 0x2f1   : > { %v431_v41 = vpop.f32.mrb[2].mxu0 }
 0x2f2   : > { %435 = vst.msk [vmem:[#allocation4] sm:$0xff] %vm303_vm3, %v434_v39  ;;  %v684_v42 = vpop.f32.mrb[3].mxu0 }
 0x2f3 PF: > { %p663_p9 = scmp.ne.s32.totalorder %s829_s25, %s827_s1 }
 0x2f4   : > { %v441_v43 = vlaneseq (!%p663_p9)  ;;  %v770_v48 = vmov (!%p663_p9), 0   ;;  %v447_v49 = vld [vmem:[#allocation2] sm:$0xff] (!%p663_p9)  ;;  %vm469_vm9 = vcmask (!%p663_p9), 7168   ;;  %vm483_vm10 = vcmask (!%p663_p9), 1043456   ;;  %v463_v0 = vld [vmem:[#allocation3] sm:$0xff] (!%p663_p9) }
 0x2f5   : > { %440 = sbr.rel (%p663_p9) target bundleno = 1347 (0x543), region = 44  ;;  %731 = vset.pattern.permute.xlu0 (!%p663_p9), %v770_v48  ;;  %732 = vset.pattern.permute.xlu1 (!%p663_p9), %v770_v48  ;;  %v479_v53 = vld [vmem:[%s847_s15] sm:$0xf] (!%p663_p9)  ;;  %v771_v54 = vmov (!%p663_p9), 0.0   ;;  %vm772_vm11 = vmmov (!%p663_p9), 0   ;;  %vm540_vm12 = vcmask (!%p663_p9), 60416  }
 0x2f6   : > { %v442_v44 = vshrl.u32 (!%p663_p9), %v441_v43, 7  ;;  %v444_v45 = vand.u32 (!%p663_p9), 127, %v441_v43  ;;  %685 = vmatprep.subr.bf16.mxu0 (!%p663_p9), %v771_v54  ;;  %v485_v55 = vsel (!%p663_p9), %vm483_vm10, %v479_v53, 0  ;;  %687 = vmatprep.mubr.msk.bf16.mxu0 (!%p663_p9), %vm772_vm11, %v771_v54 }
 0x2f7   : > { %686 = vmatpush3.bf16.msra.mxu0 (!%p663_p9), %v485_v55 }
 0x2f8   : > { %vm445_vm8 = vcmp.le.s32.totalorder (!%p663_p9), %v444_v45, %v442_v44 }
 0x2f9   : > { %v446_v46 = vsel (!%p663_p9), %vm445_vm8, %v344_v10, -1e+30  ;;  %v471_v6 = vld [vmem:[#allocation4] sm:$0xff] (!%p663_p9) }
 0x2fa   : > { %v448_v47 = vsel (!%p663_p9), %vm303_vm3, %v446_v46, -inf }
 0x2fb   : > { %449 = vmax.xlane.f32.xlu0 (!%p663_p9), %v448_v47 }
 0x388   : > { %v450_v50 = vpop.xlane.xlu0 %449 }
 0x389   : > { %v451_v51 = vmax.f32 %v447_v49, %v450_v50 }
 0x38b   : > { %v452_v52 = vsub.f32 %v447_v49, %v451_v51  ;;  %529 = vst.msk [vmem:[#allocation2] sm:$0xff] %vm469_vm9, %v451_v51  ;;  %457 = vperm.xlu0 %731, %v451_v51  }
 0x38d   : > { %v453_v62 = vmul.f32 1.442695, %v452_v52 }
 0x40a   : > { %v458_v56 = vpop.permute.xlu0 %457 }
 0x40b   : > { %v460_v57 = vsub.f32 %v446_v46, %v458_v56 }
 0x40d   : > { %v461_v58 = vmul.f32 1.442695, %v460_v57 }
 0x40f   : > { %733 = vpow2.f32 %v461_v58 }
 0x410   : > { %735 = vpow2.f32 %v453_v62 }
 0x419   : > { %v734_v59 = vpop.eup %733 }
 0x41a   : > { %v465_v60 = vsel %vm303_vm3, %v734_v59, 0.0  ;;  %v478_v61 = vpack.c.bf16 %v734_v59, %v734_v59  ;;  %v736_v63 = vpop.eup %735 }
 0x41b   : > { %466 = vadd.xlane.f32.xlu1 %v465_v60  ;;  %v464_v1 = vmul.f32 %v736_v63, %v463_v0 }
 0x41c   : > { %688 = vmatmul.mubr.msk.bf16.vlgmr.msra.gmra.mrb[0].mxu0 %vm303_vm3, %v478_v61 }
 0x42c   : > { %474 = vperm.xlu1 %732, %v736_v63  }
 0x4a8   : > { %v467_v2 = vpop.xlane.xlu1 %466 }
 0x4a9   : > { %v468_v3 = vadd.f32 %v467_v2, %v464_v1 }
 0x4ab   : > { %470 = vst.msk [vmem:[#allocation3] sm:$0xff] %vm469_vm9, %v468_v3 }
 0x4ac   : > { %v475_v7 = vpop.permute.xlu1 %474 }
 0x4ad   : > { %v477_v8 = vmul.f32 %v475_v7, %v471_v6 }
 0x4b2   : > { %v530_v4 = vld [vmem:[#allocation3] sm:$0xff] }
 0x4b3   : > { %737 = vrcp.f32 %v530_v4 }
 0x4bd   : > { %v738_v5 = vpop.eup %737 }
 0x4be   : > { %535 = vperm.xlu1 %732, %v738_v5  }
 0x4ef   : > { %v521_v9 = vpop.f32.mrb[0].mxu0 }
 0x4f0   : > { %v527_v10 = vadd.f32 %v521_v9, %v477_v8  ;;  %v689_v11 = vpop.f32.mrb[1].mxu0 }
 0x4f1   : > { %v524_v12 = vpop.f32.mrb[2].mxu0 }
 0x4f2   : > { %528 = vst.msk [vmem:[#allocation4] sm:$0xff] %vm303_vm3, %v527_v10  ;;  %v690_v13 = vpop.f32.mrb[3].mxu0 }
 0x4f9   : > { %v532_v14 = vld [vmem:[#allocation4] sm:$0xff] }
 0x53d   : > { %v536_v15 = vpop.permute.xlu1 %535 }
 0x53e   : > { %v538_v16 = vmul.f32 %v536_v15, %v532_v14 }
 0x540   : > { %v539_v17 = vpack.c.bf16 %v538_v16, %v538_v16 }
 0x542   : > { %541 = vst.msk [vmem:[%s281_s18] sm:$0xf] %vm540_vm12, %v539_v17 }
 0x543 PF: > { %s17_s24 = sadd.s32 1, %s761_s24   ;;  %s894_s22 = smov %s757_s23 }
 0x544   : > { %p14_p10 = scmp.ge.s32.totalorder %s17_s24, 10   ;;  %s895_s23 = smov %s897_s0 }
 0x546   :  { %16 = sbr.rel (!%p14_p10) target bundleno = 3 (0x3), region = 80 }

</bundles_post_ra>
